<compile_context>
chip_gen: v7x
topology: tpu7x:2x2x1
jax: 0.10.0
libtpu: 0.0.40
codegen_flags: <defaults>
</compile_context>

<pallas_src>
import functools

import jax
import jax.numpy as jnp
from jax.experimental import pallas as pl
from jax.experimental.pallas import tpu as pltpu


HP = 128            # each logical H=32 block is padded to a full 128-lane block
LANE = 128          # pad class dim so the final store is lane-dense
NEG = -1e30         # bias for padded classes -> exp() underflows to exactly 0


def _vmem_spec():
    return pl.BlockSpec(memory_space=pltpu.MemorySpace.VMEM)


# ---------------------------------------------------------------- kernel -----

def gbk_fused_kernel(x_ref, adj_ref, w_ref, o_ref, *, K, step, chan, activation):
    # ---- lin1 (+bias folded into the matmul via the ones-column of x) ----
    q = jnp.dot(x_ref[...], w_ref[0, :, 0:HP], preferred_element_type=jnp.float32)
    if activation == "relu":
        q = jnp.maximum(q, 0.0)
    elif activation != "None":
        q = getattr(jax.nn, activation)(q)

    q2 = q
    adj = adj_ref[...]

    # ---- K EdgeConv layers; q stays resident in vregs/VMEM across layers ----
    for i in range(K):
        wcat = w_ref[1 + i]                       # [128, 384] = (lin1 | lin2 | floop)
        hcat = jnp.dot(q, wcat, preferred_element_type=jnp.float32)   # one MXU push
        h3 = hcat[:, 0:HP]                        # lane-aligned slices (0/128/256)
        h4 = hcat[:, HP:2 * HP]
        hf = hcat[:, 2 * HP:3 * HP]
        # per-edge gate: s_t[i, j] = sigmoid(-<h4[i], h3[j]>)  for edge (j -> i)
        # A.B^T contraction -> MXU transposed-rhs path, no XLU transpose of h3.
        s_t = jax.nn.sigmoid(-pl.dot(h4, h3, trans_b=True))
        # scatter_add(norm * x_j) over edges  ==  (adj * s_t) @ h3
        agg = jnp.dot(adj * s_t, h3, preferred_element_type=jnp.float32)
        # Reference's 2nd propagate result is discarded (it subtracts h4 directly):
        #   out = floop(Q) + step * agg - step * lin2(Q)
        out = hf + step * (agg - h4)
        # F.normalize(p=2, dim=1), eps=1e-12  (exact rsqrt on the EUP)
        inv = jax.lax.rsqrt(
            jnp.maximum(jnp.sum(out * out, axis=1, keepdims=True), 1e-24))
        q = out * inv

    q3 = q

    # ---- output head + log_softmax, stored lane-dense [N, 128] ----
    if chan == 1:
        h = jnp.dot(q3, w_ref[K + 1, :, 0:HP], preferred_element_type=jnp.float32)
    else:  # chan == 2: concat([q2, q3]) @ W.T  ==  q2 @ Wa + q3 @ Wb
        h = (jnp.dot(q2, w_ref[K + 1, :, 0:HP], preferred_element_type=jnp.float32)
             + jnp.dot(q3, w_ref[K + 1, :, HP:2 * HP],
                       preferred_element_type=jnp.float32))
    h = h + w_ref[K + 1, 0:1, 2 * HP:3 * HP]   # padded classes get NEG bias -> exp == 0
    m = jnp.max(h, axis=1, keepdims=True)
    lse = m + jnp.log(jnp.sum(jnp.exp(h - m), axis=1, keepdims=True))
    o_ref[...] = (h - lse).astype(o_ref.dtype)


# --------------------------------------------------------------- wrappers ----

def prepare_fused_params(params, *, K, hidden, nfeat, nclass, chan):
    """Host-side weight plumbing: transpose to [in,out], pad every segment to a
    full 128-lane block, fold the lin1 bias into an extra input row, and pack
    everything into ONE slab of shape [K+2, 128, 3*128]."""
    slab = jnp.zeros((K + 2, HP, 3 * HP), jnp.float32)

    # block 0: lin1 with bias folded in (row `nfeat` multiplies the ones-column of x)
    w_in = jnp.zeros((HP, HP), jnp.float32)
    w_in = w_in.at[:nfeat, :hidden].set(params["lin1_w"].T)
    w_in = w_in.at[nfeat, :hidden].set(params["lin1_b"][0])
    slab = slab.at[0, :, 0:HP].set(w_in)

    # blocks 1..K: per-layer (lin1 | lin2 | floop), each padded to a 128-lane block
    for i, (w1, w2, wf) in enumerate(params["layers"]):
        slab = slab.at[1 + i, :hidden, 0:hidden].set(w1.T)
        slab = slab.at[1 + i, :hidden, HP:HP + hidden].set(w2.T)
        slab = slab.at[1 + i, :hidden, 2 * HP:2 * HP + hidden].set(wf.T)

    # block K+1: output head (Wa | Wb | bias-row), class dim padded to 128 lanes
    if chan == 1:
        slab = slab.at[K + 1, :hidden, 0:nclass].set(params["out1_w"].T)
        b = params["out1_b"][0]
    else:
        slab = slab.at[K + 1, :hidden, 0:nclass].set(params["out2_w"][:, :hidden].T)
        slab = slab.at[K + 1, :hidden, HP:HP + nclass].set(
            params["out2_w"][:, hidden:].T)
        b = params["out2_b"][0]
    bias = jnp.full((LANE,), NEG, jnp.float32).at[:nclass].set(b)
    slab = slab.at[K + 1, 0, 2 * HP:2 * HP + LANE].set(bias)
    return slab


def gbk_forward(x, adj, slab, *, K, step, chan, activation, nclass):
    n, f = x.shape
    # lane-pad x to 128 and append a "ones" column at index f (folds the lin1 bias)
    x_pad = jnp.zeros((n, HP), jnp.float32).at[:, :f].set(x).at[:, f].set(1.0)
    kernel = functools.partial(gbk_fused_kernel, K=K, step=step, chan=chan,
                               activation=activation)
    out_full = pl.pallas_call(
        kernel,
        out_shape=jax.ShapeDtypeStruct((n, LANE), jnp.float32),
        in_specs=[_vmem_spec()] * 3,
        out_specs=_vmem_spec(),
    )(x_pad, adj, slab)
    return out_full[:, :nclass]


# --------------------------------------------------------- pure-JAX check ----

def _ref_forward(x, params, row, col, n, *, K, step, chan, activation):
    q = x @ params["lin1_w"].T + params["lin1_b"]
    if activation == "relu":
        q = jnp.maximum(q, 0.0)
    q2 = q
    for i in range(K):
        w1, w2, wf = params["layers"][i]
        h3, h4, hf = q @ w1.T, q @ w2.T, q @ wf.T
        s = jax.nn.sigmoid(-jnp.sum(h3[row] * h4[col], axis=1))
        agg = jnp.zeros_like(h3).at[col].add(s[:, None] * h3[row])
        out = hf + step * agg - step * h4
        nrm = jnp.sqrt(jnp.sum(out * out, axis=1, keepdims=True))
        q = out / jnp.maximum(nrm, 1e-12)
    q3 = q
    if chan == 1:
        h = q @ params["out1_w"].T + params["out1_b"]
    else:
        h = jnp.concatenate([q2, q3], 1) @ params["out2_w"].T + params["out2_b"]
    return jax.nn.log_softmax(h, axis=1)


# -------------------------------------------------------------------- main ----

def _init_linear(key, out_f, in_f, bias=True):
    k1, k2 = jax.random.split(key)
    bound = 1.0 / (in_f ** 0.5)
    w = jax.random.uniform(k1, (out_f, in_f), jnp.float32, -bound, bound)
    if not bias:
        return w
    b = jax.random.uniform(k2, (1, out_f), jnp.float32, -bound, bound)
    return w, b


if __name__ == "__main__":
    N, NFEAT, HIDDEN, NCLASS = 16, 16, 32, 4
    K, ALPHA, CHAN, ACT = 2, 0.1, 1, "relu"

    key = jax.random.PRNGKey(0)
    keys = jax.random.split(key, 4 + 3 * K)

    x = jax.random.normal(keys[0], (N, NFEAT), jnp.float32)

    # Bidirectional ring graph: edge_index = [row (source), col (target)].
    src = jnp.arange(N, dtype=jnp.int32)
    dst = (src + 1) % N
    row = jnp.concatenate([src, dst])
    col = jnp.concatenate([dst, src])
    # Dense adjacency for the scatter-add: adj[target, source] += 1.
    adj = jnp.zeros((N, N), jnp.float32).at[col, row].add(1.0)

    lin1_w, lin1_b = _init_linear(keys[1], HIDDEN, NFEAT)
    out1_w, out1_b = _init_linear(keys[2], NCLASS, HIDDEN)
    out2_w, out2_b = _init_linear(keys[3], NCLASS, 2 * HIDDEN)
    layers = []
    for i in range(K):
        w1 = _init_linear(keys[4 + 3 * i + 0], HIDDEN, HIDDEN, bias=False)
        w2 = _init_linear(keys[4 + 3 * i + 1], HIDDEN, HIDDEN, bias=False)
        wf = _init_linear(keys[4 + 3 * i + 2], HIDDEN, HIDDEN, bias=False)
        layers.append((w1, w2, wf))

    params = dict(lin1_w=lin1_w, lin1_b=lin1_b, out1_w=out1_w, out1_b=out1_b,
                  out2_w=out2_w, out2_b=out2_b, layers=layers)

    slab = prepare_fused_params(params, K=K, hidden=HIDDEN, nfeat=NFEAT,
                                nclass=NCLASS, chan=CHAN)
    out = gbk_forward(x, adj, slab, K=K, step=ALPHA, chan=CHAN,
                      activation=ACT, nclass=NCLASS)
    out = jax.block_until_ready(out)

    ref = _ref_forward(x, params, row, col, N, K=K, step=ALPHA, chan=CHAN,
                       activation=ACT)
    assert out.shape == (N, NCLASS)
    assert jnp.allclose(out, ref, atol=1e-4, rtol=1e-4), "mismatch vs reference"

    print("KERNEL_OK")
</pallas_src>

<mosaic_0001>
module attributes {stable_mosaic.version = 11 : i64} {
  func.func @gbk_fused_kernel(%arg0: memref<16x128xf32, #tpu.memory_space<vmem>>, %arg1: memref<16x16xf32, #tpu.memory_space<vmem>>, %arg2: memref<4x128x384xf32, #tpu.memory_space<vmem>>, %arg3: memref<16x128xf32, #tpu.memory_space<vmem>>) attributes {dimension_semantics = [], scalar_prefetch = 0 : i64, scratch_operands = 0 : i64, tpu.core_type = #tpu.core_type<tc>} {
    %c0 = arith.constant 0 : index
    %c0_0 = arith.constant 0 : index
    %0 = vector.load %arg0[%c0, %c0_0] : memref<16x128xf32, #tpu.memory_space<vmem>>, vector<16x128xf32>
    %c0_1 = arith.constant 0 : index
    %c0_2 = arith.constant 0 : index
    %c0_3 = arith.constant 0 : index
    %1 = vector.load %arg2[%c0_1, %c0_2, %c0_3] : memref<4x128x384xf32, #tpu.memory_space<vmem>>, vector<1x128x128xf32>
    %2 = vector.shape_cast %1 : vector<1x128x128xf32> to vector<128x128xf32>
    %cst = arith.constant dense<0.000000e+00> : vector<16x128xf32>
    %3 = tpu.matmul %0, %2, %cst {dimension_numbers = #tpu.dot_dimension_numbers<[1], [0], [0], [1], [0, 0, 1, 1], [], []>} : vector<16x128xf32>, vector<128x128xf32>, vector<16x128xf32> -> vector<16x128xf32>
    %cst_4 = arith.constant 0.000000e+00 : f32
    %4 = vector.broadcast %cst_4 : f32 to vector<16x128xf32>
    %5 = arith.maximumf %3, %4 : vector<16x128xf32>
    %c0_5 = arith.constant 0 : index
    %c0_6 = arith.constant 0 : index
    %6 = vector.load %arg1[%c0_5, %c0_6] : memref<16x16xf32, #tpu.memory_space<vmem>>, vector<16x16xf32>
    %c1 = arith.constant 1 : index
    %c0_7 = arith.constant 0 : index
    %c0_8 = arith.constant 0 : index
    %7 = vector.load %arg2[%c1, %c0_7, %c0_8] : memref<4x128x384xf32, #tpu.memory_space<vmem>>, vector<1x128x384xf32>
    %8 = vector.shape_cast %7 : vector<1x128x384xf32> to vector<128x384xf32>
    %cst_9 = arith.constant dense<0.000000e+00> : vector<16x384xf32>
    %9 = tpu.matmul %5, %8, %cst_9 {dimension_numbers = #tpu.dot_dimension_numbers<[1], [0], [0], [1], [0, 0, 1, 1], [], []>} : vector<16x128xf32>, vector<128x384xf32>, vector<16x384xf32> -> vector<16x384xf32>
    %10 = vector.extract_strided_slice %9 {offsets = [0, 0], sizes = [16, 128], strides = [1, 1]} : vector<16x384xf32> to vector<16x128xf32>
    %11 = vector.extract_strided_slice %9 {offsets = [0, 128], sizes = [16, 128], strides = [1, 1]} : vector<16x384xf32> to vector<16x128xf32>
    %12 = vector.extract_strided_slice %9 {offsets = [0, 256], sizes = [16, 128], strides = [1, 1]} : vector<16x384xf32> to vector<16x128xf32>
    %cst_10 = arith.constant dense<0.000000e+00> : vector<16x16xf32>
    %13 = tpu.matmul %11, %10, %cst_10 {dimension_numbers = #tpu.dot_dimension_numbers<[1], [1], [0], [0], [0, 0, 1, 0], [], []>} : vector<16x128xf32>, vector<16x128xf32>, vector<16x16xf32> -> vector<16x16xf32>
    %cst_11 = arith.constant 0.000000e+00 : f32
    %14 = vector.broadcast %cst_11 : f32 to vector<16x16xf32>
    %15 = arith.subf %14, %13 : vector<16x16xf32>
    %16 = arith.negf %15 : vector<16x16xf32>
    %17 = math.exp %16 : vector<16x16xf32>
    %cst_12 = arith.constant 1.000000e+00 : f32
    %18 = vector.broadcast %cst_12 : f32 to vector<16x16xf32>
    %19 = arith.addf %18, %17 : vector<16x16xf32>
    %20 = arith.divf %18, %19 : vector<16x16xf32>
    %21 = arith.mulf %6, %20 : vector<16x16xf32>
    %cst_13 = arith.constant dense<0.000000e+00> : vector<16x128xf32>
    %22 = tpu.matmul %21, %10, %cst_13 {dimension_numbers = #tpu.dot_dimension_numbers<[1], [0], [0], [1], [0, 0, 1, 1], [], []>} : vector<16x16xf32>, vector<16x128xf32>, vector<16x128xf32> -> vector<16x128xf32>
    %23 = arith.subf %22, %11 : vector<16x128xf32>
    %cst_14 = arith.constant 1.000000e-01 : f32
    %24 = vector.broadcast %cst_14 : f32 to vector<16x128xf32>
    %25 = arith.mulf %24, %23 : vector<16x128xf32>
    %26 = arith.addf %12, %25 : vector<16x128xf32>
    %27 = arith.mulf %26, %26 : vector<16x128xf32>
    %cst_15 = arith.constant dense<0.000000e+00> : vector<16xf32>
    %28 = vector.multi_reduction <add>, %27, %cst_15 [1] : vector<16x128xf32> to vector<16xf32>
    %29 = vector.shape_cast %28 : vector<16xf32> to vector<16x1xf32>
    %cst_16 = arith.constant 1.000000e-24 : f32
    %30 = vector.broadcast %cst_16 : f32 to vector<16x1xf32>
    %31 = arith.maximumf %29, %30 : vector<16x1xf32>
    %32 = math.rsqrt %31 : vector<16x1xf32>
    %33 = vector.broadcast %32 : vector<16x1xf32> to vector<16x128xf32>
    %34 = arith.mulf %26, %33 : vector<16x128xf32>
    %c2 = arith.constant 2 : index
    %c0_17 = arith.constant 0 : index
    %c0_18 = arith.constant 0 : index
    %35 = vector.load %arg2[%c2, %c0_17, %c0_18] : memref<4x128x384xf32, #tpu.memory_space<vmem>>, vector<1x128x384xf32>
    %36 = vector.shape_cast %35 : vector<1x128x384xf32> to vector<128x384xf32>
    %cst_19 = arith.constant dense<0.000000e+00> : vector<16x384xf32>
    %37 = tpu.matmul %34, %36, %cst_19 {dimension_numbers = #tpu.dot_dimension_numbers<[1], [0], [0], [1], [0, 0, 1, 1], [], []>} : vector<16x128xf32>, vector<128x384xf32>, vector<16x384xf32> -> vector<16x384xf32>
    %38 = vector.extract_strided_slice %37 {offsets = [0, 0], sizes = [16, 128], strides = [1, 1]} : vector<16x384xf32> to vector<16x128xf32>
    %39 = vector.extract_strided_slice %37 {offsets = [0, 128], sizes = [16, 128], strides = [1, 1]} : vector<16x384xf32> to vector<16x128xf32>
    %40 = vector.extract_strided_slice %37 {offsets = [0, 256], sizes = [16, 128], strides = [1, 1]} : vector<16x384xf32> to vector<16x128xf32>
    %cst_20 = arith.constant dense<0.000000e+00> : vector<16x16xf32>
    %41 = tpu.matmul %39, %38, %cst_20 {dimension_numbers = #tpu.dot_dimension_numbers<[1], [1], [0], [0], [0, 0, 1, 0], [], []>} : vector<16x128xf32>, vector<16x128xf32>, vector<16x16xf32> -> vector<16x16xf32>
    %cst_21 = arith.constant 0.000000e+00 : f32
    %42 = vector.broadcast %cst_21 : f32 to vector<16x16xf32>
    %43 = arith.subf %42, %41 : vector<16x16xf32>
    %44 = arith.negf %43 : vector<16x16xf32>
    %45 = math.exp %44 : vector<16x16xf32>
    %cst_22 = arith.constant 1.000000e+00 : f32
    %46 = vector.broadcast %cst_22 : f32 to vector<16x16xf32>
    %47 = arith.addf %46, %45 : vector<16x16xf32>
    %48 = arith.divf %46, %47 : vector<16x16xf32>
    %49 = arith.mulf %6, %48 : vector<16x16xf32>
    %cst_23 = arith.constant dense<0.000000e+00> : vector<16x128xf32>
    %50 = tpu.matmul %49, %38, %cst_23 {dimension_numbers = #tpu.dot_dimension_numbers<[1], [0], [0], [1], [0, 0, 1, 1], [], []>} : vector<16x16xf32>, vector<16x128xf32>, vector<16x128xf32> -> vector<16x128xf32>
    %51 = arith.subf %50, %39 : vector<16x128xf32>
    %cst_24 = arith.constant 1.000000e-01 : f32
    %52 = vector.broadcast %cst_24 : f32 to vector<16x128xf32>
    %53 = arith.mulf %52, %51 : vector<16x128xf32>
    %54 = arith.addf %40, %53 : vector<16x128xf32>
    %55 = arith.mulf %54, %54 : vector<16x128xf32>
    %cst_25 = arith.constant dense<0.000000e+00> : vector<16xf32>
    %56 = vector.multi_reduction <add>, %55, %cst_25 [1] : vector<16x128xf32> to vector<16xf32>
    %57 = vector.shape_cast %56 : vector<16xf32> to vector<16x1xf32>
    %cst_26 = arith.constant 1.000000e-24 : f32
    %58 = vector.broadcast %cst_26 : f32 to vector<16x1xf32>
    %59 = arith.maximumf %57, %58 : vector<16x1xf32>
    %60 = math.rsqrt %59 : vector<16x1xf32>
    %61 = vector.broadcast %60 : vector<16x1xf32> to vector<16x128xf32>
    %62 = arith.mulf %54, %61 : vector<16x128xf32>
    %c3 = arith.constant 3 : index
    %c0_27 = arith.constant 0 : index
    %c0_28 = arith.constant 0 : index
    %63 = vector.load %arg2[%c3, %c0_27, %c0_28] : memref<4x128x384xf32, #tpu.memory_space<vmem>>, vector<1x128x128xf32>
    %64 = vector.shape_cast %63 : vector<1x128x128xf32> to vector<128x128xf32>
    %cst_29 = arith.constant dense<0.000000e+00> : vector<16x128xf32>
    %65 = tpu.matmul %62, %64, %cst_29 {dimension_numbers = #tpu.dot_dimension_numbers<[1], [0], [0], [1], [0, 0, 1, 1], [], []>} : vector<16x128xf32>, vector<128x128xf32>, vector<16x128xf32> -> vector<16x128xf32>
    %c3_30 = arith.constant 3 : index
    %c0_31 = arith.constant 0 : index
    %c256 = arith.constant 256 : index
    %66 = vector.load %arg2[%c3_30, %c0_31, %c256] : memref<4x128x384xf32, #tpu.memory_space<vmem>>, vector<1x1x128xf32>
    %67 = vector.shape_cast %66 : vector<1x1x128xf32> to vector<1x128xf32>
    %68 = vector.broadcast %67 : vector<1x128xf32> to vector<16x128xf32>
    %69 = arith.addf %65, %68 : vector<16x128xf32>
    %cst_32 = arith.constant dense<0xFF800000> : vector<16xf32>
    %70 = vector.multi_reduction <maximumf>, %69, %cst_32 [1] : vector<16x128xf32> to vector<16xf32>
    %71 = vector.shape_cast %70 : vector<16xf32> to vector<16x1xf32>
    %72 = vector.broadcast %71 : vector<16x1xf32> to vector<16x128xf32>
    %73 = arith.subf %69, %72 : vector<16x128xf32>
    %74 = math.exp %73 : vector<16x128xf32>
    %cst_33 = arith.constant dense<0.000000e+00> : vector<16xf32>
    %75 = vector.multi_reduction <add>, %74, %cst_33 [1] : vector<16x128xf32> to vector<16xf32>
    %76 = vector.shape_cast %75 : vector<16xf32> to vector<16x1xf32>
    %77 = math.log %76 : vector<16x1xf32>
    %78 = arith.addf %71, %77 : vector<16x1xf32>
    %79 = vector.broadcast %78 : vector<16x1xf32> to vector<16x128xf32>
    %80 = arith.subf %69, %79 : vector<16x128xf32>
    %c0_34 = arith.constant 0 : index
    %c0_35 = arith.constant 0 : index
    %81 = vector.load %arg3[%c0_34, %c0_35] : memref<16x128xf32, #tpu.memory_space<vmem>>, vector<16x128xf32>
    tpu.vector_store %arg3[%c0_34, %c0_35], %80 {strides = array<i32>} : memref<16x128xf32, #tpu.memory_space<vmem>>, vector<16x128xf32>,
    return
  }
}

</mosaic_0001>

<bundles_post_ra>
// kernel: tpu_custom_call.1
= control target key start
LH: loop header
LB: loop body
LE: loop exit
PB: predicated region body
PF: predicated region fallthrough
CT: control target
= control target key end

     0   :  { %8 = vsyncpa [#allocation3], 0  ;;  %s1806_s0 = inlined_call_operand.hbm [shape: f32[16,128], index: 0, kind: input, shape index: {}]   ;;  %s1807_s1 = inlined_call_operand.hbm [shape: f32[16,16], index: 1, kind: input, shape index: {}]   ;;  %s1808_s2 = inlined_call_operand.hbm [shape: f32[4,128,384], index: 2, kind: input, shape index: {}]   ;;  %s1809_s3 = inlined_call_operand.hbm [shape: f32[16,128], index: 3, kind: output, shape index: {}]  }
   0x1   :  { %9 = vsyncpa [#allocation6], 0 }
   0x2   :  { %10 = vsyncpa [#allocation4], 0  ;;  %s1678_s12 = smov [#allocation5]   ;;  %s1679_s14 = smov [#allocation2]  }
   0x3   :  { %s28_s13 = sshll.u32 %s1678_s12, 4  ;;  %s16_s15 = sshll.u32 %s1679_s14, 4  ;;  %s29_s13 = int_to_ptr.vmem [resolvable:$true] %s28_s13  ;;  %s1707_s15 = int_to_ptr.vmem [resolvable:$true] %s16_s15 }
   0x4   :  { %s1584_s18 = scalar_lea.hbm %s1807_s1, 256 }
   0x5   :  { %p1585_p0 = scmp.ne.s32.totalorder %s1807_s1, %s1584_s18  ;;  %p1588_p1 = scmp.lt.u32.totalorder %s1584_s18, %s1807_s1 }
   0x7   :  { %p1590_p2 = pnand %p1588_p1, %p1585_p0 }
   0x9   :  { %1593 = shalt.err (!%p1590_p2)
}
   0xa   :  { %s1594_s23 = scalar_lea.vmem %s29_s13, 256  ;;  %p1599_p4 = scmp.lt.s32.totalorder %s29_s13, %s29_s13 }
   0xb   :  { %p1595_p3 = scmp.ne.s32.totalorder %s29_s13, %s1594_s23  ;;  %p1600_p5 = scmp.lt.s32.totalorder %s1594_s23, %s1594_s23 }
   0xd   :  { %p1601_p6 = por %p1600_p5, %p1599_p4 }
   0xf   :  { %p1602_p7 = pnand %p1601_p6, %p1595_p3 }
  0x11   :  { %1605 = shalt.err (!%p1602_p7)
}
  0x12   :  { %s1680_s24 = smov 128   ;;  %s1681_s25 = smov 8  }
  0x13   :  { %34 = dma.hbm_to_vmem [thread:$0]  %s1807_s1, 256, %s29_s13, [#allocation6], %s1680_s24, %s1680_s24, %s1681_s25  }
  0x14   :  { %s1606_s30 = scalar_lea.hbm %s1806_s0, 256 }
  0x15   :  { %p1607_p8 = scmp.ne.s32.totalorder %s1806_s0, %s1606_s30  ;;  %p1610_p9 = scmp.lt.u32.totalorder %s1606_s30, %s1806_s0 }
  0x17   :  { %p1612_p10 = pnand %p1610_p9, %p1607_p8 }
  0x19   :  { %1615 = shalt.err (!%p1612_p10)
}
  0x1a   :  { %s1616_s8 = scalar_lea.vmem %s1707_s15, 256  ;;  %p1621_p12 = scmp.lt.s32.totalorder %s1707_s15, %s1707_s15 }
  0x1b   :  { %p1617_p11 = scmp.ne.s32.totalorder %s1707_s15, %s1616_s8  ;;  %p1622_p13 = scmp.lt.s32.totalorder %s1616_s8, %s1616_s8 }
  0x1d   :  { %p1623_p0 = por %p1622_p13, %p1621_p12 }
  0x1f   :  { %p1624_p1 = pnand %p1623_p0, %p1617_p11 }
  0x21   :  { %1627 = shalt.err (!%p1624_p1)
}
  0x22   :  { %22 = dma.hbm_to_vmem [thread:$0]  %s1806_s0, 256, %s1707_s15, [#allocation3], %s1680_s24, %s1680_s24, %s1681_s25  }
  0x23   :  { %s1682_s10 = smov [#allocation7]   ;;  %s1628_s14 = scalar_lea.hbm %s1808_s2, 24576 }
  0x24   :  { %s40_s11 = sshll.u32 %s1682_s10, 4  ;;  %p1629_p2 = scmp.ne.s32.totalorder %s1808_s2, %s1628_s14  ;;  %s41_s11 = int_to_ptr.vmem [resolvable:$true] %s40_s11 }
  0x25   :  { %p1632_p3 = scmp.lt.u32.totalorder %s1628_s14, %s1808_s2 }
  0x27   :  { %p1634_p4 = pnand %p1632_p3, %p1629_p2 }
  0x29   :  { %1637 = shalt.err (!%p1634_p4)
}
  0x2a   :  { %s1638_s20 = scalar_lea.vmem %s41_s11, 24576  ;;  %p1643_p6 = scmp.lt.s32.totalorder %s41_s11, %s41_s11 }
  0x2b   :  { %p1639_p5 = scmp.ne.s32.totalorder %s41_s11, %s1638_s20  ;;  %p1644_p7 = scmp.lt.s32.totalorder %s1638_s20, %s1638_s20 }
  0x2d   :  { %p1645_p8 = por %p1644_p7, %p1643_p6 }
  0x2f   :  { %p1646_p9 = pnand %p1645_p8, %p1639_p5 }
  0x31   :  { %1649 = shalt.err (!%p1646_p9)
}
  0x32   :  { %s1683_s0 = smov 384   ;;  %s1684_s15 = smov 24  }
  0x33   :  { %46 = dma.hbm_to_vmem [thread:$0]  %s1808_s2, 24576, %s41_s11, [#allocation6], %s1683_s0, %s1683_s0, %s1684_s15  }
  0x34   :  { %1672 = dma.done.wait [#allocation3], 256  }
  0x35   :  { %1673 = vsyncadd [#allocation3], 4294967040 }
  0x36   :  { %1674 = dma.done.wait [#allocation6], 24832  }
  0x37   :  { %1675 = vsyncadd [#allocation6], 4294942464  ;;  %v58_v0 = vld [vmem:[#allocation7] sm:$0xff]  ;;  %v59_v1 = vld [vmem:[#allocation7 + $0x18] sm:$0xff]  ;;  %vm445_vm0 = vcmask 130048   ;;  %s1686_s2 = smov [#allocation8]  }
  0x38   :  { %v60_v2 = vld [vmem:[#allocation7 + $0x30] sm:$0xff]  ;;  %v1335_v3 = vpack.c.bf16 %v59_v1, %v58_v0  ;;  %v61_v4 = vld [vmem:[#allocation7 + $0x48] sm:$0xff]  ;;  %v62_v6 = vld [vmem:[#allocation7 + $0x60] sm:$0xff]  ;;  %s1058_s23 = sshll.u32 %s1686_s2, 4  ;;  %s1059_s23 = int_to_ptr.vmem [resolvable:$true] %s1058_s23 }
  0x39   :  { %v1339_v5 = vpack.c.bf16 %v61_v4, %v60_v2  ;;  %v63_v7 = vld [vmem:[#allocation7 + $0x78] sm:$0xff]  ;;  %v64_v9 = vld [vmem:[#allocation7 + $0x90] sm:$0xff]  ;;  %v65_v10 = vld [vmem:[#allocation7 + $0xa8] sm:$0xff]  ;;  %s1650_s26 = scalar_lea.vmem %s1059_s23, 256  ;;  %p1655_p11 = scmp.lt.s32.totalorder %s1059_s23, %s1059_s23 }
  0x3a   :  { %1336 = vmatprep.subr.bf16.mxu0 %v1335_v3  ;;  %v1343_v8 = vpack.c.bf16 %v63_v7, %v62_v6  ;;  %v56_v11 = vld [vmem:[#allocation2] sm:$0xff]  ;;  %v155_v12 = vld [vmem:[#allocation7 + $0x188] sm:$0xff]  ;;  %v157_v16 = vld [vmem:[#allocation7 + $0x198] sm:$0xff]  ;;  %v1347_v21 = vpack.c.bf16 %v65_v10, %v64_v9  ;;  %p1651_p10 = scmp.ne.s32.totalorder %s1059_s23, %s1650_s26  ;;  %p1656_p12 = scmp.lt.s32.totalorder %s1650_s26, %s1650_s26 }
  0x3b   :  { %1338 = vmatpush3.bf16.msra.mxu0 %v1335_v3  ;;  %1199 = vmatprep.mubr.f32.mxu0 %v56_v11  ;;  %v158_v13 = vld [vmem:[#allocation7 + $0x1a0] sm:$0xff]  ;;  %v161_v18 = vld [vmem:[#allocation7 + $0x1b8] sm:$0xff]  ;;  %v164_v19 = vld [vmem:[#allocation7 + $0x1d0] sm:$0xff] }
  0x3c   :  { %1340 = vmatprep.subr.bf16.mxu0 %v1339_v5  ;;  %v154_v14 = vld [vmem:[#allocation7 + $0x180] sm:$0xff]  ;;  %v1367_v15 = vpack.c.bf16 %v158_v13, %v155_v12  ;;  %v160_v20 = vld [vmem:[#allocation7 + $0x1b0] sm:$0xff]  ;;  %v1371_v23 = vpack.c.bf16 %v164_v19, %v161_v18  ;;  %v163_v24 = vld [vmem:[#allocation7 + $0x1c8] sm:$0xff]  ;;  %p1657_p13 = por %p1656_p12, %p1655_p11 }
  0x3d   :  { %v1369_v17 = vpack.c.bf16 %v157_v16, %v154_v14  ;;  %v66_v22 = vld [vmem:[#allocation7 + $0xc0] sm:$0xff]  ;;  %v67_v25 = vld [vmem:[#allocation7 + $0xd8] sm:$0xff]  ;;  %v1373_v26 = vpack.c.bf16 %v163_v24, %v160_v20  ;;  %v167_v27 = vld [vmem:[#allocation7 + $0x1e8] sm:$0xff] }
  0x3e   :  { %1368 = vmatprep.subr.bf16.mxu1 %v1367_v15  ;;  %v170_v28 = vld [vmem:[#allocation7 + $0x200] sm:$0xff]  ;;  %v169_v31 = vld [vmem:[#allocation7 + $0x1f8] sm:$0xff]  ;;  %v176_v33 = vld [vmem:[#allocation7 + $0x230] sm:$0xff]  ;;  %v1351_v34 = vpack.c.bf16 %v67_v25, %v66_v22  ;;  %p1658_p0 = pnand %p1657_p13, %p1651_p10 }
  0x3f   :  { %1342 = vmatpush3.bf16.msra.mxu0 %v1339_v5  ;;  %1370 = vmatpush1.bf16.msra.mxu1 %v1369_v17  ;;  %v1375_v29 = vpack.c.bf16 %v170_v28, %v167_v27  ;;  %v166_v30 = vld [vmem:[#allocation7 + $0x1e0] sm:$0xff]  ;;  %v173_v32 = vld [vmem:[#allocation7 + $0x218] sm:$0xff]  ;;  %v68_v35 = vld [vmem:[#allocation7 + $0xf0] sm:$0xff] }
  0x40   :  { %1344 = vmatprep.subr.bf16.mxu0 %v1343_v8  ;;  %1372 = vmatprep.subr.bf16.mxu1 %v1371_v23  ;;  %v69_v36 = vld [vmem:[#allocation7 + $0x108] sm:$0xff]  ;;  %v1377_v37 = vpack.c.bf16 %v169_v31, %v166_v30  ;;  %v1379_v38 = vpack.c.bf16 %v176_v33, %v173_v32  ;;  %v172_v39 = vld [vmem:[#allocation7 + $0x210] sm:$0xff]  ;;  %v182_v42 = vld [vmem:[#allocation7 + $0x260] sm:$0xff] }
  0x41   :  { %v175_v40 = vld [vmem:[#allocation7 + $0x228] sm:$0xff]  ;;  %v1355_v43 = vpack.c.bf16 %v69_v36, %v68_v35  ;;  %v70_v44 = vld [vmem:[#allocation7 + $0x120] sm:$0xff]  ;;  %v71_v45 = vld [vmem:[#allocation7 + $0x138] sm:$0xff] }
  0x42   :  { %v179_v41 = vld [vmem:[#allocation7 + $0x248] sm:$0xff]  ;;  %v1381_v46 = vpack.c.bf16 %v175_v40, %v172_v39  ;;  %v178_v48 = vld [vmem:[#allocation7 + $0x240] sm:$0xff]  ;;  %v181_v49 = vld [vmem:[#allocation7 + $0x258] sm:$0xff]  ;;  %v1359_v52 = vpack.c.bf16 %v71_v45, %v70_v44 }
  0x43   :  { %1346 = vmatpush3.bf16.msra.mxu0 %v1343_v8  ;;  %1374 = vmatpush1.bf16.msra.mxu1 %v1373_v26  ;;  %v1383_v47 = vpack.c.bf16 %v182_v42, %v179_v41  ;;  %v185_v50 = vld [vmem:[#allocation7 + $0x278] sm:$0xff]  ;;  %v188_v51 = vld [vmem:[#allocation7 + $0x290] sm:$0xff]  ;;  %v73_v54 = vld [vmem:[#allocation7 + $0x168] sm:$0xff]  ;;  %v1385_v55 = vpack.c.bf16 %v181_v49, %v178_v48 }
  0x44   :  { %1348 = vmatprep.subr.bf16.mxu0 %v1347_v21  ;;  %1376 = vmatprep.subr.bf16.mxu1 %v1375_v29  ;;  %v72_v53 = vld [vmem:[#allocation7 + $0x150] sm:$0xff]  ;;  %v1387_v56 = vpack.c.bf16 %v188_v51, %v185_v50  ;;  %v187_v58 = vld [vmem:[#allocation7 + $0x288] sm:$0xff]  ;;  %v194_v60 = vld [vmem:[#allocation7 + $0x2c0] sm:$0xff] }
  0x45   :  { %v184_v57 = vld [vmem:[#allocation7 + $0x270] sm:$0xff]  ;;  %v191_v59 = vld [vmem:[#allocation7 + $0x2a8] sm:$0xff]  ;;  %v1363_v61 = vpack.c.bf16 %v73_v54, %v72_v53  ;;  %v190_v2 = vld [vmem:[#allocation7 + $0x2a0] sm:$0xff] }
  0x46   :  { %v156_v62 = vld [vmem:[#allocation7 + $0x190] sm:$0xff]  ;;  %v159_v63 = vld [vmem:[#allocation7 + $0x1a8] sm:$0xff]  ;;  %v1389_v0 = vpack.c.bf16 %v187_v58, %v184_v57  ;;  %v1391_v1 = vpack.c.bf16 %v194_v60, %v191_v59  ;;  %v193_v3 = vld [vmem:[#allocation7 + $0x2b8] sm:$0xff] }
  0x47   :  { %1350 = vmatpush3.bf16.msra.mxu0 %v1347_v21  ;;  %1378 = vmatpush1.bf16.msra.mxu1 %v1377_v37  ;;  %v1399_v4 = vpack.c.bf16 %v159_v63, %v156_v62  ;;  %v162_v5 = vld [vmem:[#allocation7 + $0x1c0] sm:$0xff]  ;;  %v165_v6 = vld [vmem:[#allocation7 + $0x1d8] sm:$0xff]  ;;  %v1393_v7 = vpack.c.bf16 %v193_v3, %v190_v2  ;;  %v57_v8 = vld [vmem:[#allocation2 + $0x8] sm:$0xff] }
  0x48   :  { %1352 = vmatprep.subr.bf16.mxu0 %v1351_v34  ;;  %1380 = vmatprep.subr.bf16.mxu1 %v1379_v38  ;;  %v1403_v9 = vpack.c.bf16 %v165_v6, %v162_v5  ;;  %v168_v10 = vld [vmem:[#allocation7 + $0x1f0] sm:$0xff]  ;;  %v171_v11 = vld [vmem:[#allocation7 + $0x208] sm:$0xff]  ;;  %v174_v13 = vld [vmem:[#allocation7 + $0x220] sm:$0xff] }
  0x49   :  { %v1407_v12 = vpack.c.bf16 %v171_v11, %v168_v10  ;;  %v177_v14 = vld [vmem:[#allocation7 + $0x238] sm:$0xff]  ;;  %v180_v16 = vld [vmem:[#allocation7 + $0x250] sm:$0xff]  ;;  %v183_v17 = vld [vmem:[#allocation7 + $0x268] sm:$0xff] }
  0x4a   :  { %v1411_v15 = vpack.c.bf16 %v177_v14, %v174_v13  ;;  %v1415_v18 = vpack.c.bf16 %v183_v17, %v180_v16  ;;  %v186_v19 = vld [vmem:[#allocation7 + $0x280] sm:$0xff]  ;;  %v189_v20 = vld [vmem:[#allocation7 + $0x298] sm:$0xff]  ;;  %v192_v22 = vld [vmem:[#allocation7 + $0x2b0] sm:$0xff] }
  0x4b   :  { %1354 = vmatpush3.bf16.msra.mxu0 %v1351_v34  ;;  %1382 = vmatpush1.bf16.msra.mxu1 %v1381_v46  ;;  %v1419_v21 = vpack.c.bf16 %v189_v20, %v186_v19  ;;  %v195_v23 = vld [vmem:[#allocation7 + $0x2c8] sm:$0xff]  ;;  %v197_v25 = vld [vmem:[#allocation7 + $0x2d8] sm:$0xff]  ;;  %v200_v26 = vld [vmem:[#allocation7 + $0x2f0] sm:$0xff]  ;;  %v1685_v34 = vmov 0.0  }
  0x4c   :  { %1356 = vmatprep.subr.bf16.mxu0 %v1355_v43  ;;  %1384 = vmatprep.subr.bf16.mxu1 %v1383_v47  ;;  %v1423_v24 = vpack.c.bf16 %v195_v23, %v192_v22  ;;  %v1395_v27 = vpack.c.bf16 %v200_v26, %v197_v25  ;;  %v196_v28 = vld [vmem:[#allocation7 + $0x2d0] sm:$0xff]  ;;  %v199_v29 = vld [vmem:[#allocation7 + $0x2e8] sm:$0xff]  ;;  %v198_v30 = vld [vmem:[#allocation7 + $0x2e0] sm:$0xff] }
  0x4d   :  { %v1397_v31 = vpack.c.bf16 %v199_v29, %v196_v28  ;;  %v201_v32 = vld [vmem:[#allocation7 + $0x2f8] sm:$0xff]  ;;  %266 = vmatprep.mubr.f32.mxu1 %v1685_v34  ;;  %v547_v62 = vld [vmem:[#allocation7 + $0x308] sm:$0xff]  ;;  %v550_v63 = vld [vmem:[#allocation7 + $0x320] sm:$0xff] }
  0x4e   :  { %v1427_v33 = vpack.c.bf16 %v201_v32, %v198_v30  ;;  %v1771_v58 = vld [vmem:[#allocation5 + $0x8] sm:$0xff]  ;;  %v555_v11 = vld [vmem:[#allocation7 + $0x348] sm:$0xff]  ;;  %v562_v13 = vld [vmem:[#allocation7 + $0x380] sm:$0xff] }
  0x4f   :  { %1358 = vmatpush3.bf16.msra.mxu0 %v1355_v43  ;;  %1386 = vmatpush1.bf16.msra.mxu1 %v1385_v55  ;;  %v549_v2 = vld [vmem:[#allocation7 + $0x318] sm:$0xff]  ;;  %v558_v19 = vld [vmem:[#allocation7 + $0x360] sm:$0xff]  ;;  %v568_v22 = vld [vmem:[#allocation7 + $0x3b0] sm:$0xff] }
  0x50   :  { %1360 = vmatprep.subr.bf16.mxu0 %v1359_v52  ;;  %1388 = vmatprep.subr.bf16.mxu1 %v1387_v56  ;;  %v1769_v56 = vld [vmem:[#allocation5] sm:$0xff]  ;;  %v553_v3 = vld [vmem:[#allocation7 + $0x338] sm:$0xff]  ;;  %v571_v32 = vld [vmem:[#allocation7 + $0x3c8] sm:$0xff] }
  0x51   :  { %v557_v16 = vld [vmem:[#allocation7 + $0x358] sm:$0xff]  ;;  %v560_v23 = vld [vmem:[#allocation7 + $0x370] sm:$0xff] }
  0x52   :  { %v561_v20 = vld [vmem:[#allocation7 + $0x378] sm:$0xff]  ;;  %v564_v30 = vld [vmem:[#allocation7 + $0x390] sm:$0xff] }
  0x53   :  { %1362 = vmatpush3.bf16.msra.mxu0 %v1359_v52  ;;  %1390 = vmatpush1.bf16.msra.mxu1 %v1389_v0  ;;  %v546_v0 = vld [vmem:[#allocation7 + $0x300] sm:$0xff]  ;;  %v1449_v26 = vpack.c.bf16 %v561_v20, %v558_v19  ;;  %v569_v28 = vld [vmem:[#allocation7 + $0x3b8] sm:$0xff] }
  0x54   :  { %1364 = vmatprep.subr.bf16.mxu0 %v1363_v61  ;;  %1392 = vmatprep.subr.bf16.mxu1 %v1391_v1  ;;  %v1439_v1 = vpack.c.bf16 %v550_v63, %v547_v62  ;;  %v1441_v5 = vpack.c.bf16 %v549_v2, %v546_v0  ;;  %v586_v63 = vld [vmem:[#allocation7 + $0x440] sm:$0xff]  ;;  %v581_v2 = vld [vmem:[#allocation7 + $0x418] sm:$0xff] }
  0x55   :  { %v578_v0 = vld [vmem:[#allocation7 + $0x400] sm:$0xff] }
  0x57   :  { %1366 = vmatpush3.bf16.msra.mxu0 %v1363_v61  ;;  %1394 = vmatpush1.bf16.msra.mxu1 %v1393_v7  ;;  %v548_v7 = vld [vmem:[#allocation7 + $0x310] sm:$0xff] }
  0x58   :  { %1400 = vmatprep.subr.bf16.mxu0 %v1399_v4  ;;  %1396 = vmatprep.subr.bf16.mxu1 %v1395_v27  ;;  %v566_v27 = vld [vmem:[#allocation7 + $0x3a0] sm:$0xff] }
  0x5a   :  { %1200 = vmatmul.mubr.f32.vlgmr.msra.gmra.mrb[0].mxu0 %v57_v8  ;;  %v551_v8 = vld [vmem:[#allocation7 + $0x328] sm:$0xff] }
  0x5b   :  { %1402 = vmatpush3.bf16.msra.mxu0 %v1399_v4  ;;  %1398 = vmatpush1.bf16.msra.mxu1 %v1397_v31  ;;  %v556_v4 = vld [vmem:[#allocation7 + $0x350] sm:$0xff]  ;;  %v1471_v10 = vpack.c.bf16 %v551_v8, %v548_v7  ;;  %v567_v31 = vld [vmem:[#allocation7 + $0x3a8] sm:$0xff]  ;;  %v589_v7 = vld [vmem:[#allocation7 + $0x458] sm:$0xff] }
  0x5c   :  { %1404 = vmatprep.subr.bf16.mxu0 %v1403_v9  ;;  %v1443_v6 = vpack.c.bf16 %v556_v4, %v553_v3  ;;  %1440 = vmatprep.subr.bf16.mxu1 %v1439_v1  ;;  %v582_v3 = vld [vmem:[#allocation7 + $0x420] sm:$0xff]  ;;  %v585_v4 = vld [vmem:[#allocation7 + $0x438] sm:$0xff]  ;;  %v592_v8 = vld [vmem:[#allocation7 + $0x470] sm:$0xff] }
  0x5f   :  { %1406 = vmatpush3.bf16.msra.mxu0 %v1403_v9  ;;  %v552_v9 = vld [vmem:[#allocation7 + $0x330] sm:$0xff] }
  0x60   :  { %1408 = vmatprep.subr.bf16.mxu0 %v1407_v12  ;;  %v1445_v14 = vpack.c.bf16 %v555_v11, %v552_v9  ;;  %v584_v9 = vld [vmem:[#allocation7 + $0x430] sm:$0xff]  ;;  %v587_v11 = vld [vmem:[#allocation7 + $0x448] sm:$0xff] }
  0x63   :  { %1410 = vmatpush3.bf16.msra.mxu0 %v1407_v12  ;;  %v559_v12 = vld [vmem:[#allocation7 + $0x368] sm:$0xff] }
  0x64   :  { %1412 = vmatprep.subr.bf16.mxu0 %v1411_v15  ;;  %v1447_v17 = vpack.c.bf16 %v562_v13, %v559_v12  ;;  %v588_v12 = vld [vmem:[#allocation7 + $0x450] sm:$0xff]  ;;  %v591_v13 = vld [vmem:[#allocation7 + $0x468] sm:$0xff] }
  0x67   :  { %1414 = vmatpush3.bf16.msra.mxu0 %v1411_v15  ;;  %v554_v15 = vld [vmem:[#allocation7 + $0x340] sm:$0xff] }
  0x68   :  { %1416 = vmatprep.subr.bf16.mxu0 %v1415_v18 }
  0x6b   :  { %1418 = vmatpush3.bf16.msra.mxu0 %v1415_v18  ;;  %v1475_v18 = vpack.c.bf16 %v557_v16, %v554_v15  ;;  %v1469_v15 = vpack.c.bf16 %v591_v13, %v588_v12  ;;  %v590_v16 = vld [vmem:[#allocation7 + $0x460] sm:$0xff]  ;;  %v950_v13 = vld [vmem:[#allocation7 + $0x5b8] sm:$0xff] }
  0x6c   :  { %1420 = vmatprep.subr.bf16.mxu0 %v1419_v21  ;;  %v949_v12 = vld [vmem:[#allocation7 + $0x5a0] sm:$0xff] }
  0x6f   :  { %1422 = vmatpush3.bf16.msra.mxu0 %v1419_v21  ;;  %v565_v21 = vld [vmem:[#allocation7 + $0x398] sm:$0xff] }
  0x70   :  { %1424 = vmatprep.subr.bf16.mxu0 %v1423_v24  ;;  %v1451_v29 = vpack.c.bf16 %v568_v22, %v565_v21 }
  0x73   :  { %1426 = vmatpush3.bf16.msra.mxu0 %v1423_v24  ;;  %v563_v24 = vld [vmem:[#allocation7 + $0x388] sm:$0xff] }
  0x74   :  { %1428 = vmatprep.subr.bf16.mxu0 %v1427_v33  ;;  %v1479_v25 = vpack.c.bf16 %v563_v24, %v560_v23 }
  0x77   :  { %1430 = vmatpush3.bf16.msra.mxu0 %v1427_v33  ;;  %v574_v33 = vld [vmem:[#allocation7 + $0x3e0] sm:$0xff] }
 0x12d   :  { %v1201_v35 = vpop.f32.mrb[0].mxu0 }
 0x12e   :  { %v140_v36 = vpop.f32.mrb[1].mxu0  ;;  %v150_v38 = vmax.f32 %v1201_v35, 0.0  ;;  %v1483_v35 = vpack.c.bf16 %v569_v28, %v566_v27 }
 0x12f   :  { %v149_v37 = vmax.f32 %v140_v36, 0.0  ;;  %v1453_v36 = vpack.c.bf16 %v567_v31, %v564_v30 }
 0x131   :  { %267 = vmatmul.mubr.f32.vlgmr.msra.gmra.mrb[0].mxu1 %v149_v37  ;;  %1234 = vmatprep.mubr.f32.mxu0 %v149_v37  ;;  %v1455_v37 = vpack.c.bf16 %v574_v33, %v571_v32 }
 0x132   :  { %1235 = vmatmul.mubr.f32.vlgmr.msra.gmra.mrb[2].mxu0 %v150_v38  ;;  %272 = vmatprep.mubr.f32.mxu1 %v1685_v34 }
 0x133   :  { %1442 = vmatpush1.bf16.msra.mxu1 %v1441_v5  ;;  %v1491_v5 = vpack.c.bf16 %v581_v2, %v578_v0 }
 0x134   :  { %1444 = vmatprep.subr.bf16.mxu1 %v1443_v6  ;;  %v1465_v6 = vpack.c.bf16 %v585_v4, %v582_v3 }
 0x135   :  { %273 = vmatmul.mubr.f32.gmra.mrb[2].mxu1 %v150_v38 }
 0x136   :  { %658 = vmatprep.mubr.f32.mxu1 %v1685_v34 }
 0x137   :  { %1446 = vmatpush1.bf16.msra.mxu1 %v1445_v14  ;;  %v1495_v14 = vpack.c.bf16 %v587_v11, %v584_v9  ;;  %v947_v9 = vld [vmem:[#allocation7 + $0x570] sm:$0xff] }
 0x138   :  { %1448 = vmatprep.subr.bf16.mxu1 %v1447_v17  ;;  %v593_v17 = vld [vmem:[#allocation7 + $0x478] sm:$0xff] }
 0x13b   :  { %1450 = vmatpush1.bf16.msra.mxu1 %v1449_v26 }
 0x13c   :  { %1452 = vmatprep.subr.bf16.mxu1 %v1451_v29 }
 0x13f   :  { %1454 = vmatpush1.bf16.msra.mxu1 %v1453_v36 }
 0x140   :  { %1456 = vmatprep.subr.bf16.mxu1 %v1455_v37 }
 0x204   :  { %v268_v39 = vpop.f32.mrb[0].mxu1 }
 0x205   :  { %v1759_v40 = vpop.f32.mrb[1].mxu1  ;;  %v1761_v41 = vpop.f32.mrb[2].mxu0 }
 0x206   :  { %v1763_v42 = vpop.f32.mrb[3].mxu0  ;;  %1241 = vmatprep.mubr.f32.mxu0 %v1759_v40 }
 0x208   :  { %v274_v43 = vpop.f32.mrb[2].mxu1 }
 0x209   :  { %v1431_v44 = vpack.c.bf16 %v274_v43, %v268_v39  ;;  %v1766_v45 = vpop.f32.mrb[3].mxu1 }
 0x20b   :  { %1432 = vmatprep.subr.bf16.mxu0 %v1431_v44 }
 0x20c   :  { %1434 = vmatpush3.bf16.xpose.msra.mxu0 %v1431_v44 }
 0x20d   :  { %1436 = vmatprep.subr.bf16.mxu0 %v1431_v44 }
 0x213   :  { %1242 = vmatmul.mubr.f32.vlgmr.msra.gmra.mrb[4].mxu0 %v1766_v45 }
 0x214   :  { %1438 = vmatpush3.bf16.msra.mxu0 %v1431_v44 }
 0x215   :  { %1472 = vmatprep.subr.bf16.mxu0 %v1471_v10 }
 0x2e6   :  { %v1243_v46 = vpop.f32.mrb[4].mxu0 }
 0x2e7   :  { %v430_v47 = vsub.f32 0.0, %v1243_v46  ;;  %v420_v48 = vpop.f32.mrb[5].mxu0 }
 0x2e8   :  { %v429_v49 = vsub.f32 0.0, %v420_v48 }
 0x2e9   :  { %v1072_v50 = vmul.f32 -1.442695, %v430_v47 }
 0x2ea   :  { %v1071_v51 = vmul.f32 -1.442695, %v429_v49 }
 0x2eb   :  { %1552 = vpow2.f32 %v1072_v50 }
 0x2ec   :  { %1554 = vpow2.f32 %v1071_v51 }
 0x2f5   :  { %v1553_v52 = vpop.eup %1552 }
 0x2f6   :  { %v1555_v53 = vpop.eup %1554  ;;  %v438_v54 = vadd.f32 1.0, %v1553_v52  ;;  %v570_v52 = vld [vmem:[#allocation7 + $0x3c0] sm:$0xff] }
 0x2f7   :  { %v437_v55 = vadd.f32 1.0, %v1555_v53  ;;  %v573_v53 = vld [vmem:[#allocation7 + $0x3d8] sm:$0xff] }
 0x2f8   :  { %1556 = vrcp.f32 %v438_v54  ;;  %v1457_v54 = vpack.c.bf16 %v573_v53, %v570_v52  ;;  %v937_v52 = vld [vmem:[#allocation7 + $0x480] sm:$0xff]  ;;  %v938_v53 = vld [vmem:[#allocation7 + $0x498] sm:$0xff] }
 0x2f9   :  { %1558 = vrcp.f32 %v437_v55  ;;  %v580_v55 = vld [vmem:[#allocation7 + $0x410] sm:$0xff] }
 0x2fa   :  { %1458 = vmatpush1.bf16.msra.mxu1 %v1457_v54  ;;  %v939_v54 = vld [vmem:[#allocation7 + $0x4b0] sm:$0xff] }
 0x302   :  { %v1557_v57 = vpop.eup %1556 }
 0x303   :  { %v1559_v59 = vpop.eup %1558  ;;  %v444_v61 = vmul.f32 %v1557_v57, %v1771_v58 }
 0x304   :  { %v443_v60 = vmul.f32 %v1559_v59, %v1769_v56  ;;  %v575_v59 = vld [vmem:[#allocation7 + $0x3e8] sm:$0xff] }
 0x306   :  { %1248 = vmatprep.mubr.msk.f32.mxu0 %vm445_vm0, %v443_v60  ;;  %v576_v60 = vld [vmem:[#allocation7 + $0x3f0] sm:$0xff] }
 0x307   :  { %1249 = vmatmul.mubr.msk.f32.vlgmr.msra.gmra.mrb[6].mxu0 %vm445_vm0, %v444_v61 }
 0x308   :  { %1474 = vmatpush3.bf16.msra.mxu0 %v1471_v10  ;;  %v1467_v10 = vpack.c.bf16 %v592_v8, %v589_v7  ;;  %v946_v7 = vld [vmem:[#allocation7 + $0x558] sm:$0xff] }
 0x309   :  { %1476 = vmatprep.subr.bf16.mxu0 %v1475_v18 }
 0x30c   :  { %1478 = vmatpush3.bf16.msra.mxu0 %v1475_v18  ;;  %v1499_v18 = vpack.c.bf16 %v593_v17, %v590_v16  ;;  %v952_v16 = vld [vmem:[#allocation7 + $0x5e8] sm:$0xff] }
 0x30d   :  { %1480 = vmatprep.subr.bf16.mxu0 %v1479_v25 }
 0x310   :  { %1482 = vmatpush3.bf16.msra.mxu0 %v1479_v25 }
 0x311   :  { %1484 = vmatprep.subr.bf16.mxu0 %v1483_v35 }
 0x314   :  { %1486 = vmatpush3.bf16.msra.mxu0 %v1483_v35 }
 0x3da   :  { %v1250_v38 = vpop.f32.mrb[6].mxu0 }
 0x3db   :  { %v528_v39 = vsub.f32 %v1250_v38, %v1766_v45  ;;  %v518_v43 = vpop.f32.mrb[7].mxu0  ;;  %v577_v45 = vld [vmem:[#allocation7 + $0x3f8] sm:$0xff] }
 0x3dc   :  { %v527_v44 = vsub.f32 %v518_v43, %v1759_v40  ;;  %v572_v40 = vld [vmem:[#allocation7 + $0x3d0] sm:$0xff]  ;;  %v1459_v57 = vpack.c.bf16 %v580_v55, %v577_v45  ;;  %v1511_v45 = vpack.c.bf16 %v938_v53, %v937_v52  ;;  %v940_v55 = vld [vmem:[#allocation7 + $0x4c8] sm:$0xff] }
 0x3dd   :  { %v530_v46 = vmul.f32 0.1, %v528_v39  ;;  %v1487_v61 = vpack.c.bf16 %v575_v59, %v572_v40  ;;  %v1515_v40 = vpack.c.bf16 %v940_v55, %v939_v54  ;;  %v942_v59 = vld [vmem:[#allocation7 + $0x4f8] sm:$0xff] }
 0x3de   :  { %v529_v47 = vmul.f32 0.1, %v527_v44  ;;  %1460 = vmatprep.subr.bf16.mxu1 %v1459_v57  ;;  %v941_v57 = vld [vmem:[#allocation7 + $0x4e0] sm:$0xff] }
 0x3df   :  { %v1780_v48 = vadd.f32 %v1761_v41, %v530_v46  ;;  %v579_v41 = vld [vmem:[#allocation7 + $0x408] sm:$0xff]  ;;  %1488 = vmatprep.subr.bf16.mxu0 %v1487_v61 }
 0x3e0   :  { %v531_v49 = vadd.f32 %v529_v47, %v1763_v42  ;;  %v1461_v62 = vpack.c.bf16 %v579_v41, %v576_v60  ;;  %v583_v42 = vld [vmem:[#allocation7 + $0x428] sm:$0xff]  ;;  %1490 = vmatpush3.bf16.msra.mxu0 %v1487_v61  ;;  %v1519_v60 = vpack.c.bf16 %v942_v59, %v941_v57  ;;  %v943_v41 = vld [vmem:[#allocation7 + $0x510] sm:$0xff] }
 0x3e1   :  { %v534_v51 = vmul.f32 %v1780_v48, %v1780_v48  ;;  %v1463_v1 = vpack.c.bf16 %v586_v63, %v583_v42  ;;  %1492 = vmatprep.subr.bf16.mxu0 %v1491_v5 }
 0x3e2   :  { %v533_v50 = vmul.f32 %v531_v49, %v531_v49  ;;  %1462 = vmatpush1.bf16.msra.mxu1 %v1461_v62 }
 0x3e3   :  { %1464 = vmatprep.subr.bf16.mxu1 %v1463_v1 }
 0x3e4   :  { %535 = vadd.xlane.f32.xlu0 %v533_v50  ;;  %1494 = vmatpush3.bf16.msra.mxu0 %v1491_v5 }
 0x3e5   :  { %1496 = vmatprep.subr.bf16.mxu0 %v1495_v14 }
 0x3e6   :  { %1466 = vmatpush1.bf16.msra.mxu1 %v1465_v6  ;;  %v945_v6 = vld [vmem:[#allocation7 + $0x540] sm:$0xff] }
 0x3e7   :  { %1468 = vmatprep.subr.bf16.mxu1 %v1467_v10  ;;  %v1527_v8 = vpack.c.bf16 %v946_v7, %v945_v6  ;;  %v948_v10 = vld [vmem:[#allocation7 + $0x588] sm:$0xff] }
 0x3e8   :  { %537 = vadd.xlane.f32.xlu0 %v534_v51  ;;  %1498 = vmatpush3.bf16.msra.mxu0 %v1495_v14  ;;  %v1531_v11 = vpack.c.bf16 %v948_v10, %v947_v9  ;;  %v951_v14 = vld [vmem:[#allocation7 + $0x5d0] sm:$0xff] }
 0x3e9   :  { %1500 = vmatprep.subr.bf16.mxu0 %v1499_v18  ;;  %v1539_v17 = vpack.c.bf16 %v952_v16, %v951_v14 }
 0x3ea   :  { %1470 = vmatpush1.bf16.msra.mxu1 %v1469_v15  ;;  %v1535_v15 = vpack.c.bf16 %v950_v13, %v949_v12 }
 0x3ec   :  { %1502 = vmatpush3.bf16.msra.mxu0 %v1499_v18 }
 0x471   :  { %v536_v19 = vpop.xlane.xlu0 %535 }
 0x472   :  { %v539_v20 = vmax.f32 %v536_v19, 1e-24 }
 0x474   :  { %1560 = vrsqrt.f32 %v539_v20 }
 0x475   :  { %v538_v21 = vpop.xlane.xlu0 %537 }
 0x476   :  { %v540_v22 = vmax.f32 %v538_v21, 1e-24 }
 0x478   :  { %1562 = vrsqrt.f32 %v540_v22 }
 0x47e   :  { %v1561_v23 = vpop.eup %1560 }
 0x47f   :  { %v543_v24 = vmul.f32 %v1561_v23, %v531_v49 }
 0x481   :  { %659 = vmatmul.mubr.f32.vlgmr.msra.gmra.mrb[4].mxu1 %v543_v24  ;;  %1283 = vmatprep.mubr.f32.mxu0 %v543_v24 }
 0x482   :  { %v1563_v25 = vpop.eup %1562  ;;  %664 = vmatprep.mubr.f32.mxu1 %v1685_v34 }
 0x483   :  { %v544_v26 = vmul.f32 %v1563_v25, %v1780_v48 }
 0x485   :  { %665 = vmatmul.mubr.f32.gmra.mrb[6].mxu1 %v544_v26  ;;  %1284 = vmatmul.mubr.f32.vlgmr.msra.gmra.mrb[8].mxu0 %v544_v26  ;;  %v953_v26 = vld [vmem:[#allocation7 + $0x490] ss:$0 sm:$0xff] }
 0x554   :  { %v660_v27 = vpop.f32.mrb[4].mxu1 }
 0x555   :  { %v662_v28 = vpop.f32.mrb[5].mxu1 }
 0x556   :  { %1290 = vmatprep.mubr.f32.mxu1 %v662_v28 }
 0x558   :  { %v666_v29 = vpop.f32.mrb[6].mxu1  ;;  %v1285_v30 = vpop.f32.mrb[8].mxu0 }
 0x559   :  { %v1503_v31 = vpack.c.bf16 %v666_v29, %v660_v27  ;;  %v668_v32 = vpop.f32.mrb[7].mxu1  ;;  %v737_v33 = vpop.f32.mrb[9].mxu0 }
 0x55b   :  { %1504 = vmatprep.subr.bf16.mxu1 %v1503_v31 }
 0x55c   :  { %1506 = vmatpush3.bf16.xpose.msra.mxu1 %v1503_v31 }
 0x55d   :  { %1508 = vmatprep.subr.bf16.mxu1 %v1503_v31 }
 0x563   :  { %1291 = vmatmul.mubr.f32.vlgmr.msra.gmra.mrb[8].mxu1 %v668_v32 }
 0x564   :  { %1510 = vmatpush3.bf16.msra.mxu1 %v1503_v31 }
 0x565   :  { %1512 = vmatprep.subr.bf16.mxu1 %v1511_v45 }
 0x636   :  { %v1292_v35 = vpop.f32.mrb[8].mxu1 }
 0x637   :  { %v822_v36 = vsub.f32 0.0, %v1292_v35  ;;  %v812_v34 = vpop.f32.mrb[9].mxu1 }
 0x638   :  { %v821_v37 = vsub.f32 0.0, %v812_v34 }
 0x639   :  { %v1076_v38 = vmul.f32 -1.442695, %v822_v36 }
 0x63a   :  { %v1075_v39 = vmul.f32 -1.442695, %v821_v37 }
 0x63b   :  { %1564 = vpow2.f32 %v1076_v38 }
 0x63c   :  { %1566 = vpow2.f32 %v1075_v39 }
 0x645   :  { %v1565_v43 = vpop.eup %1564 }
 0x646   :  { %v1567_v44 = vpop.eup %1566  ;;  %v830_v46 = vadd.f32 1.0, %v1565_v43 }
 0x647   :  { %v829_v47 = vadd.f32 1.0, %v1567_v44 }
 0x648   :  { %1568 = vrcp.f32 %v830_v46 }
 0x649   :  { %1570 = vrcp.f32 %v829_v47 }
 0x652   :  { %v1569_v48 = vpop.eup %1568 }
 0x653   :  { %v1571_v49 = vpop.eup %1570  ;;  %v836_v51 = vmul.f32 %v1569_v48, %v1771_v58 }
 0x654   :  { %v835_v50 = vmul.f32 %v1571_v49, %v1769_v56  ;;  %v944_v56 = vld [vmem:[#allocation7 + $0x528] sm:$0xff] }
 0x655   :  { %v1523_v58 = vpack.c.bf16 %v944_v56, %v943_v41 }
 0x656   :  { %1297 = vmatprep.mubr.msk.f32.mxu1 %vm445_vm0, %v835_v50 }
 0x657   :  { %1298 = vmatmul.mubr.msk.f32.vlgmr.msra.gmra.mrb[10].mxu1 %vm445_vm0, %v836_v51 }
 0x658   :  { %1514 = vmatpush3.bf16.msra.mxu1 %v1511_v45 }
 0x659   :  { %1516 = vmatprep.subr.bf16.mxu1 %v1515_v40 }
 0x65c   :  { %1518 = vmatpush3.bf16.msra.mxu1 %v1515_v40 }
 0x65d   :  { %1520 = vmatprep.subr.bf16.mxu1 %v1519_v60 }
 0x660   :  { %1522 = vmatpush3.bf16.msra.mxu1 %v1519_v60 }
 0x661   :  { %1524 = vmatprep.subr.bf16.mxu1 %v1523_v58 }
 0x664   :  { %1526 = vmatpush3.bf16.msra.mxu1 %v1523_v58 }
 0x665   :  { %1528 = vmatprep.subr.bf16.mxu1 %v1527_v8 }
 0x668   :  { %1530 = vmatpush3.bf16.msra.mxu1 %v1527_v8 }
 0x669   :  { %1532 = vmatprep.subr.bf16.mxu1 %v1531_v11 }
 0x66c   :  { %1534 = vmatpush3.bf16.msra.mxu1 %v1531_v11 }
 0x66d   :  { %1536 = vmatprep.subr.bf16.mxu1 %v1535_v15 }
 0x670   :  { %1538 = vmatpush3.bf16.msra.mxu1 %v1535_v15 }
 0x671   :  { %1540 = vmatprep.subr.bf16.mxu1 %v1539_v17 }
 0x674   :  { %1542 = vmatpush3.bf16.msra.mxu1 %v1539_v17 }
 0x72a   :  { %v1299_v61 = vpop.f32.mrb[10].mxu1 }
 0x72b   :  { %v919_v62 = vsub.f32 %v1299_v61, %v668_v32  ;;  %v909_v42 = vpop.f32.mrb[11].mxu1 }
 0x72c   :  { %v918_v63 = vsub.f32 %v909_v42, %v662_v28 }
 0x72d   :  { %v921_v0 = vmul.f32 0.1, %v919_v62 }
 0x72e   :  { %v920_v1 = vmul.f32 0.1, %v918_v63 }
 0x72f   :  { %v923_v2 = vadd.f32 %v1285_v30, %v921_v0 }
 0x730   :  { %v922_v3 = vadd.f32 %v920_v1, %v737_v33 }
 0x731   :  { %v925_v5 = vmul.f32 %v923_v2, %v923_v2 }
 0x732   :  { %v924_v4 = vmul.f32 %v922_v3, %v922_v3 }
 0x734   :  { %926 = vadd.xlane.f32.xlu1 %v924_v4 }
 0x738   :  { %928 = vadd.xlane.f32.xlu1 %v925_v5 }
 0x7c1   :  { %v927_v18 = vpop.xlane.xlu1 %926 }
 0x7c2   :  { %v930_v19 = vmax.f32 %v927_v18, 1e-24 }
 0x7c4   :  { %1572 = vrsqrt.f32 %v930_v19 }
 0x7c5   :  { %v929_v20 = vpop.xlane.xlu1 %928 }
 0x7c6   :  { %v931_v21 = vmax.f32 %v929_v20, 1e-24 }
 0x7c8   :  { %1574 = vrsqrt.f32 %v931_v21 }
 0x7ce   :  { %v1573_v22 = vpop.eup %1572 }
 0x7cf   :  { %v934_v23 = vmul.f32 %v1573_v22, %v922_v3 }
 0x7d1   :  { %1332 = vmatprep.mubr.f32.mxu1 %v934_v23 }
 0x7d2   :  { %v1575_v24 = vpop.eup %1574 }
 0x7d3   :  { %v935_v25 = vmul.f32 %v1575_v24, %v923_v2 }
 0x7d5   :  { %1333 = vmatmul.mubr.f32.vlgmr.msra.gmra.mrb[12].mxu1 %v935_v25 }
 0x8a8   :  { %v1334_v27 = vpop.f32.mrb[12].mxu1 }
 0x8a9   :  { %v1026_v28 = vadd.f32 %v1334_v27, %v953_v26  ;;  %v1020_v29 = vpop.f32.mrb[13].mxu1 }
 0x8aa   :  { %v1021_v30 = vadd.f32 %v1020_v29, %v953_v26 }
 0x8ab   :  { %1031 = vmax.xlane.f32.xlu1 %v1026_v28 }
 0x8ac   :  { %1029 = vmax.xlane.f32.xlu0 %v1021_v30 }
 0x938   :  { %v1032_v31 = vpop.xlane.xlu1 %1031 }
 0x939   :  { %v1034_v32 = vsub.f32 %v1026_v28, %v1032_v31  ;;  %v1030_v33 = vpop.xlane.xlu0 %1029 }
 0x93a   :  { %v1033_v35 = vsub.f32 %v1021_v30, %v1030_v33 }
 0x93b   :  { %v1037_v36 = vmul.f32 1.442695, %v1034_v32 }
 0x93c   :  { %v1035_v34 = vmul.f32 1.442695, %v1033_v35 }
 0x93d   :  { %1576 = vpow2.f32 %v1037_v36 }
 0x93e   :  { %1578 = vpow2.f32 %v1035_v34 }
 0x947   :  { %v1577_v37 = vpop.eup %1576 }
 0x948   :  { %v1579_v38 = vpop.eup %1578  ;;  %1041 = vadd.xlane.f32.xlu1 %v1577_v37 }
 0x949   :  { %1039 = vadd.xlane.f32.xlu0 %v1579_v38 }
 0x9d5   :  { %v1042_v39 = vpop.xlane.xlu1 %1041 }
 0x9d6   :  { %1580 = vlog2.f32 %v1042_v39  ;;  %v1040_v43 = vpop.xlane.xlu0 %1039 }
 0x9d7   :  { %1582 = vlog2.f32 %v1040_v43 }
 0x9e0   :  { %v1581_v44 = vpop.eup %1580 }
 0x9e1   :  { %v1583_v46 = vpop.eup %1582  ;;  %v1046_v47 = vmul.f32 0.6931472, %v1581_v44 }
 0x9e2   :  { %v1044_v48 = vmul.f32 0.6931472, %v1583_v46 }
 0x9e3   :  { %v1048_v49 = vadd.f32 %v1046_v47, %v1032_v31 }
 0x9e4   :  { %v1047_v50 = vadd.f32 %v1044_v48, %v1030_v33 }
 0x9e5   :  { %v1050_v51 = vsub.f32 %v1026_v28, %v1048_v49 }
 0x9e6   :  { %v1049_v52 = vsub.f32 %v1021_v30, %v1047_v50 }
 0x9e7   :  { %1052 = vst [vmem:[#allocation8 + $0x8] sm:$0xff] %v1050_v51 }
 0x9e8   :  { %1051 = vst [vmem:[#allocation8] sm:$0xff] %v1049_v52 }
 0x9e9   :  { %1661 = shalt.err (!%p1658_p0)
}
 0x9ea   :  { %s1662_s29 = scalar_lea.hbm %s1809_s3, 256 }
 0x9eb   :  { %p1663_p1 = scmp.ne.s32.totalorder %s1809_s3, %s1662_s29  ;;  %p1666_p2 = scmp.lt.u32.totalorder %s1662_s29, %s1809_s3 }
 0x9ed   :  { %p1668_p3 = pnand %p1666_p2, %p1663_p1 }
 0x9ef   :  { %1671 = shalt.err (!%p1668_p3)
}
 0x9f0   :  { %1064 = dma.vmem_to_hbm [thread:$0]  %s1059_s23, 256, %s1809_s3, [#allocation4], %s1680_s24, %s1680_s24, %s1681_s25  }
 0x9f1   :  { %1676 = dma.done.wait [#allocation4], 256  }
 0x9f2   :  { %1677 = vsyncadd [#allocation4], 4294967040 }
 0x9f3   :  { %1068 = vsyncpa [#allocation3], 1 }
 0x9f4   :  { %1069 = vsyncpa [#allocation6], 1 }
 0x9f5   :  { %1070 = vsyncpa [#allocation4], 1 }

</bundles_post_ra>
